<compile_context>
chip_gen: v7x
topology: tpu7x:2x2x1
jax: 0.10.0
libtpu: 0.0.40
codegen_flags: <defaults>
</compile_context>

<pallas_src>
import jax
import jax.numpy as jnp
from jax.experimental import pallas as pl
from jax.experimental.pallas import tpu as pltpu


_UNROLL_LIMIT = 16  # static-unroll threshold for the per-row copy loop


def _make_stack_kernel(Tb, F, T, To, H, grid_t):
    """Kernel processing Tb output time rows (x F input rows) per grid step."""
    needs_mask = grid_t * Tb * F > T  # final block overhangs x along time?

    def copy_rows(x_ref, o_ref, n_rows):
        # n_rows is a static Python int. Each row = F lane-dense, 128-aligned
        # stores (H % 128 == 0 is guaranteed on the Pallas path).
        def copy_row(j):
            for i in range(F):
                o_ref[j, :, i * H:(i + 1) * H] = x_ref[j * F + i]

        if n_rows <= _UNROLL_LIMIT:
            for j in range(n_rows):
                copy_row(j)
        else:
            @pl.loop(0, n_rows)
            def _(j):
                copy_row(j)

    def tail_block(x_ref, o_ref):
        # Final grid block: every index below is a compile-time constant.
        r0 = (grid_t - 1) * Tb          # first global output row of the block
        nvalid = To - r0                # rows of this block that are < To
        rem = T - (To - 1) * F          # valid input slots of global row To-1
        n_full = nvalid - (1 if rem < F else 0)
        copy_rows(x_ref, o_ref, n_full)
        if rem < F:
            j = nvalid - 1              # the single straddling output row
            for i in range(rem):
                o_ref[j, :, i * H:(i + 1) * H] = x_ref[j * F + i]
            # One wide zero store for the contiguous out-of-range slots
            # (matches torch.zeros_like fill).
            o_ref[j, :, rem * H:] = jnp.zeros(
                (o_ref.shape[1], (F - rem) * H), dtype=o_ref.dtype)
        # Rows [nvalid, Tb) lie past To: never read, never stored; Pallas
        # clips the partial output block on write-back.

    def kernel(x_ref, o_ref):
        if not needs_mask:
            copy_rows(x_ref, o_ref, Tb)
        elif grid_t == 1:
            tail_block(x_ref, o_ref)
        else:
            t = pl.program_id(0)

            @pl.when(t != grid_t - 1)
            def _():
                copy_rows(x_ref, o_ref, Tb)

            @pl.when(t == grid_t - 1)
            def _():
                tail_block(x_ref, o_ref)

    return kernel


def _stack_time_xla(x, F):
    """Plain-XLA path for tiny / lane-unaligned shapes."""
    T, B, H = x.shape
    To = pl.cdiv(T, F)
    pad = To * F - T
    if pad:
        x = jnp.pad(x, ((0, pad), (0, 0), (0, 0)))
    return x.reshape(To, F, B, H).transpose(0, 2, 1, 3).reshape(To, B, F * H)


def _stack_time_pallas(x, F, sublane):
    """Pallas path. Returns None when the shape should fall back to XLA."""
    T, B, H = x.shape
    To = pl.cdiv(T, F)
    itemsize = jnp.dtype(x.dtype).itemsize

    # Double-buffered (in + out) bytes per grid step are kept under `budget`;
    # this fits every generation's scoped-VMEM default / physical VMEM with
    # headroom, while keeping each DMA multi-MiB at production B/H.
    budget = 24 * 1024 * 1024

    # If a single output time row (double-buffered in + out) already exceeds
    # the budget, split the batch axis (keeps Bb a multiple of the sublane
    # packing and a divisor of B).
    Bb = B
    while 4 * F * Bb * H * itemsize > budget and Bb % (2 * sublane) == 0:
        Bb //= 2
    step_bytes = F * Bb * H * itemsize  # in-bytes (== out-bytes) per out row
    if 4 * step_bytes > 40 * 1024 * 1024:
        return None                     # cannot bound VMEM portably -> XLA

    # Rows per grid step: as big as the budget allows ...
    Tb = max(1, min(To, budget // (4 * step_bytes)))
    # ... but keep >= 2 time-grid steps whenever possible (v7x 2-TC sharding,
    # DMA/compute overlap), and prefer >= 4 / >= 8 steps as long as each
    # block still moves >= ~1 MiB.
    if To > 1:
        Tb = min(Tb, pl.cdiv(To, 2))
    for target in (8, 4):
        cap = pl.cdiv(To, target)
        if cap * step_bytes >= (1 << 20):
            Tb = min(Tb, cap)
            break

    grid_t = pl.cdiv(To, Tb)
    grid_b = B // Bb

    kernel = _make_stack_kernel(Tb, F, T, To, H, grid_t)
    bytes_accessed = (T * B * H + To * B * F * H) * itemsize
    # Explicit VMEM budget: 2 x (in block + out block) + headroom.
    vmem_limit = max(8 * 1024 * 1024,
                     int(4 * Tb * step_bytes * 1.25) + (2 << 20))

    return pl.pallas_call(
        kernel,
        out_shape=jax.ShapeDtypeStruct((To, B, F * H), x.dtype),
        grid_spec=pltpu.PrefetchScalarGridSpec(
            num_scalar_prefetch=0,
            grid=(grid_t, grid_b),
            in_specs=[pl.BlockSpec((Tb * F, Bb, H), lambda t, b: (t, b, 0))],
            out_specs=pl.BlockSpec((Tb, Bb, F * H), lambda t, b: (t, b, 0)),
        ),
        compiler_params=pltpu.CompilerParams(
            dimension_semantics=("parallel", "parallel"),
            vmem_limit_bytes=vmem_limit),
        cost_estimate=pl.CostEstimate(
            flops=0, transcendentals=0, bytes_accessed=bytes_accessed),
    )(x)


def stack_time(x, x_lens, factor):
    """Pallas implementation of StackTime.forward.

    x: (T, B, H) float, time-major.  x_lens: (B,) int.  factor: int F.
    Returns (out, new_lens) with out: (ceil(T/F), B, F*H).
    """
    F = int(factor)
    T, B, H = x.shape
    # Integer ceil-div matches torch.ceil(x_lens.float() / F).int().
    new_lens = ((x_lens.astype(jnp.int32) + F - 1) // F).astype(jnp.int32)

    if F == 1:
        return x, new_lens

    itemsize = jnp.dtype(x.dtype).itemsize
    sublane = 8 * max(1, 4 // itemsize)     # 8 (f32), 16 (bf16), 32 (i8)

    # Lane/sublane-aligned per-slot stores require H % 128 == 0 (each slot is
    # a 128-aligned, unmasked store) and B a multiple of the sublane packing;
    # otherwise a plain XLA reshape beats a lane-masked Pallas copy.
    out = None
    if H % 128 == 0 and B % sublane == 0 and B > 0 and T > 0:
        out = _stack_time_pallas(x, F, sublane)
    if out is None:
        out = _stack_time_xla(x, F)
    return out, new_lens


def _reference(x, x_lens, F):
    # Pure-JAX replica of the PyTorch forward.
    T = x.shape[0]
    seq = [x]
    for i in range(1, F):
        tmp = jnp.zeros_like(x)
        tmp = tmp.at[:T - i].set(x[i:])
        seq.append(tmp)
    ref = jnp.concatenate(seq, axis=2)[::F]
    ref_lens = jnp.ceil(x_lens.astype(jnp.float32) / F).astype(jnp.int32)
    return ref, ref_lens


def _check(name, out, out_lens, ref, ref_lens):
    assert out.shape == ref.shape and out.dtype == ref.dtype, (
        name, out.shape, ref.shape, out.dtype, ref.dtype)
    assert jnp.allclose(out, ref), f"{name}: stacked output mismatch"
    assert jnp.array_equal(out_lens, ref_lens), f"{name}: x_lens mismatch"


if __name__ == "__main__":
    key = jax.random.PRNGKey(0)
    k1, k2, k3 = jax.random.split(key, 3)

    # Case 1: aligned shape, T % F != 0 -> Pallas path, static-unroll hot loop,
    # in-kernel tail zero-fill in the final grid block.
    T, B, H, F = 10, 8, 128, 3
    x = jax.random.normal(k1, (T, B, H), dtype=jnp.float32)
    x_lens = jnp.array([10, 7, 3, 1, 10, 9, 6, 2], dtype=jnp.int32)
    out, out_lens = stack_time(x, x_lens, F)
    jax.block_until_ready(out)
    jax.block_until_ready(out_lens)
    ref, ref_lens = _reference(x, x_lens, F)
    _check("pallas/static", out, out_lens, ref, ref_lens)

    # Case 2: tiny / lane-unaligned shape (H % 128 != 0) -> XLA fallback path.
    T2, B2, H2, F2 = 8, 2, 32, 3
    x2 = jax.random.normal(k2, (T2, B2, H2), dtype=jnp.float32)
    x2_lens = jnp.array([8, 5], dtype=jnp.int32)
    out2, out2_lens = stack_time(x2, x2_lens, F2)
    jax.block_until_ready(out2)
    ref2, ref2_lens = _reference(x2, x2_lens, F2)
    _check("xla fallback", out2, out2_lens, ref2, ref2_lens)

    # Case 3: longer aligned sequence -> Pallas path with >= 2 grid steps and
    # the dynamic (pl.loop) row-copy path, plus the tail zero-fill.
    T3, B3, H3, F3 = 97, 8, 128, 2
    x3 = jax.random.normal(k3, (T3, B3, H3), dtype=jnp.float32)
    x3_lens = jnp.array([97, 64, 33, 12, 1, 97, 50, 2], dtype=jnp.int32)
    out3, out3_lens = stack_time(x3, x3_lens, F3)
    jax.block_until_ready(out3)
    ref3, ref3_lens = _reference(x3, x3_lens, F3)
    _check("pallas/loop", out3, out3_lens, ref3, ref3_lens)

    print("KERNEL_OK")
</pallas_src>

<mosaic_0001>
module attributes {stable_mosaic.version = 11 : i64} {
  func.func @kernel(%arg0: i32, %arg1: i32, %arg2: memref<6x8x128xf32, #tpu.memory_space<vmem>>, %arg3: memref<2x8x384xf32, #tpu.memory_space<vmem>>) attributes {dimension_semantics = [#tpu.dimension_semantics<parallel>, #tpu.dimension_semantics<parallel>], iteration_bounds = array<i64: 2, 1>, scalar_prefetch = 0 : i64, scratch_operands = 0 : i64, tpu.core_type = #tpu.core_type<tc>, window_params = [{transform_indices = @transform_0, window_bounds = array<i64: 6, 8, 128>}, {transform_indices = @transform_1, window_bounds = array<i64: 2, 8, 384>}]} {
    %c1_i32 = arith.constant 1 : i32
    %0 = arith.cmpi ne, %arg0, %c1_i32 : i32
    %1 = arith.extui %0 : i1 to i32
    %c0_i32 = arith.constant 0 : i32
    %2 = arith.cmpi ne, %1, %c0_i32 : i32
    scf.if %2 {
      %c0 = arith.constant 0 : index
      %c0_2 = arith.constant 0 : index
      %c0_3 = arith.constant 0 : index
      %6 = vector.load %arg2[%c0, %c0_2, %c0_3] : memref<6x8x128xf32, #tpu.memory_space<vmem>>, vector<1x8x128xf32>
      %7 = vector.shape_cast %6 : vector<1x8x128xf32> to vector<8x128xf32>
      %c0_4 = arith.constant 0 : index
      %c0_5 = arith.constant 0 : index
      %c0_6 = arith.constant 0 : index
      %8 = vector.load %arg3[%c0_4, %c0_5, %c0_6] : memref<2x8x384xf32, #tpu.memory_space<vmem>>, vector<1x8x128xf32>
      %9 = vector.shape_cast %8 : vector<1x8x128xf32> to vector<8x128xf32>
      %10 = vector.shape_cast %7 : vector<8x128xf32> to vector<1x8x128xf32>
      tpu.vector_store %arg3[%c0_4, %c0_5, %c0_6], %10 {strides = array<i32>} : memref<2x8x384xf32, #tpu.memory_space<vmem>>, vector<1x8x128xf32>,
      %c1 = arith.constant 1 : index
      %c0_7 = arith.constant 0 : index
      %c0_8 = arith.constant 0 : index
      %11 = vector.load %arg2[%c1, %c0_7, %c0_8] : memref<6x8x128xf32, #tpu.memory_space<vmem>>, vector<1x8x128xf32>
      %12 = vector.shape_cast %11 : vector<1x8x128xf32> to vector<8x128xf32>
      %c0_9 = arith.constant 0 : index
      %c0_10 = arith.constant 0 : index
      %c128 = arith.constant 128 : index
      %13 = vector.load %arg3[%c0_9, %c0_10, %c128] : memref<2x8x384xf32, #tpu.memory_space<vmem>>, vector<1x8x128xf32>
      %14 = vector.shape_cast %13 : vector<1x8x128xf32> to vector<8x128xf32>
      %15 = vector.shape_cast %12 : vector<8x128xf32> to vector<1x8x128xf32>
      tpu.vector_store %arg3[%c0_9, %c0_10, %c128], %15 {strides = array<i32>} : memref<2x8x384xf32, #tpu.memory_space<vmem>>, vector<1x8x128xf32>,
      %c2 = arith.constant 2 : index
      %c0_11 = arith.constant 0 : index
      %c0_12 = arith.constant 0 : index
      %16 = vector.load %arg2[%c2, %c0_11, %c0_12] : memref<6x8x128xf32, #tpu.memory_space<vmem>>, vector<1x8x128xf32>
      %17 = vector.shape_cast %16 : vector<1x8x128xf32> to vector<8x128xf32>
      %c0_13 = arith.constant 0 : index
      %c0_14 = arith.constant 0 : index
      %c256 = arith.constant 256 : index
      %18 = vector.load %arg3[%c0_13, %c0_14, %c256] : memref<2x8x384xf32, #tpu.memory_space<vmem>>, vector<1x8x128xf32>
      %19 = vector.shape_cast %18 : vector<1x8x128xf32> to vector<8x128xf32>
      %20 = vector.shape_cast %17 : vector<8x128xf32> to vector<1x8x128xf32>
      tpu.vector_store %arg3[%c0_13, %c0_14, %c256], %20 {strides = array<i32>} : memref<2x8x384xf32, #tpu.memory_space<vmem>>, vector<1x8x128xf32>,
      %c3 = arith.constant 3 : index
      %c0_15 = arith.constant 0 : index
      %c0_16 = arith.constant 0 : index
      %21 = vector.load %arg2[%c3, %c0_15, %c0_16] : memref<6x8x128xf32, #tpu.memory_space<vmem>>, vector<1x8x128xf32>
      %22 = vector.shape_cast %21 : vector<1x8x128xf32> to vector<8x128xf32>
      %c1_17 = arith.constant 1 : index
      %c0_18 = arith.constant 0 : index
      %c0_19 = arith.constant 0 : index
      %23 = vector.load %arg3[%c1_17, %c0_18, %c0_19] : memref<2x8x384xf32, #tpu.memory_space<vmem>>, vector<1x8x128xf32>
      %24 = vector.shape_cast %23 : vector<1x8x128xf32> to vector<8x128xf32>
      %25 = vector.shape_cast %22 : vector<8x128xf32> to vector<1x8x128xf32>
      tpu.vector_store %arg3[%c1_17, %c0_18, %c0_19], %25 {strides = array<i32>} : memref<2x8x384xf32, #tpu.memory_space<vmem>>, vector<1x8x128xf32>,
      %c4 = arith.constant 4 : index
      %c0_20 = arith.constant 0 : index
      %c0_21 = arith.constant 0 : index
      %26 = vector.load %arg2[%c4, %c0_20, %c0_21] : memref<6x8x128xf32, #tpu.memory_space<vmem>>, vector<1x8x128xf32>
      %27 = vector.shape_cast %26 : vector<1x8x128xf32> to vector<8x128xf32>
      %c1_22 = arith.constant 1 : index
      %c0_23 = arith.constant 0 : index
      %c128_24 = arith.constant 128 : index
      %28 = vector.load %arg3[%c1_22, %c0_23, %c128_24] : memref<2x8x384xf32, #tpu.memory_space<vmem>>, vector<1x8x128xf32>
      %29 = vector.shape_cast %28 : vector<1x8x128xf32> to vector<8x128xf32>
      %30 = vector.shape_cast %27 : vector<8x128xf32> to vector<1x8x128xf32>
      tpu.vector_store %arg3[%c1_22, %c0_23, %c128_24], %30 {strides = array<i32>} : memref<2x8x384xf32, #tpu.memory_space<vmem>>, vector<1x8x128xf32>,
      %c5 = arith.constant 5 : index
      %c0_25 = arith.constant 0 : index
      %c0_26 = arith.constant 0 : index
      %31 = vector.load %arg2[%c5, %c0_25, %c0_26] : memref<6x8x128xf32, #tpu.memory_space<vmem>>, vector<1x8x128xf32>
      %32 = vector.shape_cast %31 : vector<1x8x128xf32> to vector<8x128xf32>
      %c1_27 = arith.constant 1 : index
      %c0_28 = arith.constant 0 : index
      %c256_29 = arith.constant 256 : index
      %33 = vector.load %arg3[%c1_27, %c0_28, %c256_29] : memref<2x8x384xf32, #tpu.memory_space<vmem>>, vector<1x8x128xf32>
      %34 = vector.shape_cast %33 : vector<1x8x128xf32> to vector<8x128xf32>
      %35 = vector.shape_cast %32 : vector<8x128xf32> to vector<1x8x128xf32>
      tpu.vector_store %arg3[%c1_27, %c0_28, %c256_29], %35 {strides = array<i32>} : memref<2x8x384xf32, #tpu.memory_space<vmem>>, vector<1x8x128xf32>,
    } else {
    }
    %c1_i32_0 = arith.constant 1 : i32
    %3 = arith.cmpi eq, %arg0, %c1_i32_0 : i32
    %4 = arith.extui %3 : i1 to i32
    %c0_i32_1 = arith.constant 0 : i32
    %5 = arith.cmpi ne, %4, %c0_i32_1 : i32
    scf.if %5 {
      %c0 = arith.constant 0 : index
      %c0_2 = arith.constant 0 : index
      %c0_3 = arith.constant 0 : index
      %6 = vector.load %arg2[%c0, %c0_2, %c0_3] : memref<6x8x128xf32, #tpu.memory_space<vmem>>, vector<1x8x128xf32>
      %7 = vector.shape_cast %6 : vector<1x8x128xf32> to vector<8x128xf32>
      %c0_4 = arith.constant 0 : index
      %c0_5 = arith.constant 0 : index
      %c0_6 = arith.constant 0 : index
      %8 = vector.load %arg3[%c0_4, %c0_5, %c0_6] : memref<2x8x384xf32, #tpu.memory_space<vmem>>, vector<1x8x128xf32>
      %9 = vector.shape_cast %8 : vector<1x8x128xf32> to vector<8x128xf32>
      %10 = vector.shape_cast %7 : vector<8x128xf32> to vector<1x8x128xf32>
      tpu.vector_store %arg3[%c0_4, %c0_5, %c0_6], %10 {strides = array<i32>} : memref<2x8x384xf32, #tpu.memory_space<vmem>>, vector<1x8x128xf32>,
      %c1 = arith.constant 1 : index
      %c0_7 = arith.constant 0 : index
      %c0_8 = arith.constant 0 : index
      %11 = vector.load %arg2[%c1, %c0_7, %c0_8] : memref<6x8x128xf32, #tpu.memory_space<vmem>>, vector<1x8x128xf32>
      %12 = vector.shape_cast %11 : vector<1x8x128xf32> to vector<8x128xf32>
      %c0_9 = arith.constant 0 : index
      %c0_10 = arith.constant 0 : index
      %c128 = arith.constant 128 : index
      %13 = vector.load %arg3[%c0_9, %c0_10, %c128] : memref<2x8x384xf32, #tpu.memory_space<vmem>>, vector<1x8x128xf32>
      %14 = vector.shape_cast %13 : vector<1x8x128xf32> to vector<8x128xf32>
      %15 = vector.shape_cast %12 : vector<8x128xf32> to vector<1x8x128xf32>
      tpu.vector_store %arg3[%c0_9, %c0_10, %c128], %15 {strides = array<i32>} : memref<2x8x384xf32, #tpu.memory_space<vmem>>, vector<1x8x128xf32>,
      %c2 = arith.constant 2 : index
      %c0_11 = arith.constant 0 : index
      %c0_12 = arith.constant 0 : index
      %16 = vector.load %arg2[%c2, %c0_11, %c0_12] : memref<6x8x128xf32, #tpu.memory_space<vmem>>, vector<1x8x128xf32>
      %17 = vector.shape_cast %16 : vector<1x8x128xf32> to vector<8x128xf32>
      %c0_13 = arith.constant 0 : index
      %c0_14 = arith.constant 0 : index
      %c256 = arith.constant 256 : index
      %18 = vector.load %arg3[%c0_13, %c0_14, %c256] : memref<2x8x384xf32, #tpu.memory_space<vmem>>, vector<1x8x128xf32>
      %19 = vector.shape_cast %18 : vector<1x8x128xf32> to vector<8x128xf32>
      %20 = vector.shape_cast %17 : vector<8x128xf32> to vector<1x8x128xf32>
      tpu.vector_store %arg3[%c0_13, %c0_14, %c256], %20 {strides = array<i32>} : memref<2x8x384xf32, #tpu.memory_space<vmem>>, vector<1x8x128xf32>,
      %c3 = arith.constant 3 : index
      %c0_15 = arith.constant 0 : index
      %c0_16 = arith.constant 0 : index
      %21 = vector.load %arg2[%c3, %c0_15, %c0_16] : memref<6x8x128xf32, #tpu.memory_space<vmem>>, vector<1x8x128xf32>
      %22 = vector.shape_cast %21 : vector<1x8x128xf32> to vector<8x128xf32>
      %c1_17 = arith.constant 1 : index
      %c0_18 = arith.constant 0 : index
      %c0_19 = arith.constant 0 : index
      %23 = vector.load %arg3[%c1_17, %c0_18, %c0_19] : memref<2x8x384xf32, #tpu.memory_space<vmem>>, vector<1x8x128xf32>
      %24 = vector.shape_cast %23 : vector<1x8x128xf32> to vector<8x128xf32>
      %25 = vector.shape_cast %22 : vector<8x128xf32> to vector<1x8x128xf32>
      tpu.vector_store %arg3[%c1_17, %c0_18, %c0_19], %25 {strides = array<i32>} : memref<2x8x384xf32, #tpu.memory_space<vmem>>, vector<1x8x128xf32>,
      %cst = arith.constant 0.000000e+00 : f32
      %26 = vector.broadcast %cst : f32 to vector<8x256xf32>
      %c1_20 = arith.constant 1 : index
      %c0_21 = arith.constant 0 : index
      %c128_22 = arith.constant 128 : index
      %27 = vector.load %arg3[%c1_20, %c0_21, %c128_22] : memref<2x8x384xf32, #tpu.memory_space<vmem>>, vector<1x8x256xf32>
      %28 = vector.shape_cast %27 : vector<1x8x256xf32> to vector<8x256xf32>
      %29 = vector.shape_cast %26 : vector<8x256xf32> to vector<1x8x256xf32>
      tpu.vector_store %arg3[%c1_20, %c0_21, %c128_22], %29 {strides = array<i32>} : memref<2x8x384xf32, #tpu.memory_space<vmem>>, vector<1x8x256xf32>,
    } else {
    }
    return
  }
  func.func @transform_0(%arg0: i32, %arg1: i32) -> (i32, i32, i32) {
    %c0_i32 = arith.constant 0 : i32
    %c0_i32_0 = arith.constant 0 : i32
    return %arg0, %arg1, %c0_i32 : i32, i32, i32
  }
  func.func @transform_1(%arg0: i32, %arg1: i32) -> (i32, i32, i32) {
    %c0_i32 = arith.constant 0 : i32
    %c0_i32_0 = arith.constant 0 : i32
    return %arg0, %arg1, %c0_i32 : i32, i32, i32
  }
}

</mosaic_0001>

<bundles_post_ra>
// kernel: tpu_custom_call.1
= control target key start
LH: loop header
LB: loop body
LE: loop exit
PB: predicated region body
PF: predicated region fallthrough
CT: control target
= control target key end

     0   :  { %6 = vsyncpa [#allocation3], 0  ;;  %s718_s0 = inlined_call_operand.hbm [shape: f32[10,8,128], index: 0, kind: input, shape index: {}]   ;;  %s719_s1 = inlined_call_operand.hbm [shape: f32[4,8,384], index: 1, kind: output, shape index: {}]  }
   0x1   :  { %8 = vsyncpa [#allocation3 + $0x1], 0 }
   0x2   :  { %9 = vsyncpa [#allocation4], 0 }
   0x3   :  { %11 = vsyncpa [#allocation4 + $0x1], 0  ;;  %s532_s6 = smov 0   ;;  %s534_s7 = smov 0  }
   0x4   :  { %s536_s8 = smov 0   ;;  %s538_s9 = smov 0  }
   0x5   :  { %s540_s10 = smov 0   ;;  %s542_s11 = smov 0  }
   0x6 LB: > { %s307_s12 = sadd.s32 4294967295, %s513_s11   ;;  %s308_s13 = sadd.s32 4294967294, %s513_s11   ;;  %s513_s11 = sphi %s542_s11, %s17_s11   ;;  %s509_s10 = sphi %s540_s10, %s730_s10   ;;  %s505_s9 = sphi %s538_s9, %s729_s9   ;;  %s501_s8 = sphi %s536_s8, %s728_s8   ;;  %s497_s7 = sphi %s534_s7, %s727_s7   ;;  %s493_s6 = sphi %s532_s6, %s726_s6  }
   0x7   : > { %s29_s14 = sadd.s32 1, %s509_s10  ;;  %s38_s15 = sadd.s32 1, %s501_s8 }
   0x8   : > { %p31_p0 = scmp.ge.s32.totalorder %s29_s14, 2  ;;  %p45_p1 = scmp.ne.s32.totalorder %s501_s8, %s497_s7 }
   0x9   : > { %p46_p2 = scmp.eq.s32.totalorder %s513_s11, 0  ;;  %p51_p3 = scmp.ne.s32.totalorder %s497_s7, %s493_s6 }
   0xa   : > { %s732_s14 = smov (%p31_p0, %s29_s14), 0  ;;  %p52_p5 = scmp.eq.s32.totalorder %s307_s12, 0 }
   0xb   : > { %p47_p4 = por %p46_p2, %p45_p1  ;;  %s33_s16 = ssub.s32 %s509_s10, %s732_s14 }
   0xc   : > { %p77_p6 = scmp.eq.s32.totalorder %s307_s12, 1  ;;  %p36_p7 = scmp.eq.s32.totalorder %s33_s16, 0 }
   0xd   : > { %p575_p8 = por %p52_p5, %p51_p3  ;;  %p83_p10 = scmp.eq.s32.totalorder %s308_s13, 1 }
   0xe   : > { %p579_p9 = por %p77_p6, %p45_p1  ;;  %p720_p12 = scmp.ge.s32.totalorder %s513_s11, 2 }
   0xf   : > { %s584_s19 = scalar_select %p36_p7, %s501_s8, %s38_s15  }
  0x10   : > { %p586_p11 = por %p83_p10, %p51_p3  ;;  %99 = sbr.rel (%p720_p12) target bundleno = 58 (0x3a), region = 16 }
  0x12   : > { %s723_s20 = scalar_select %p586_p11, 1, 0 }
  0x17   : > { %102 = sbr.rel (!%p47_p4) target bundleno = 58 (0x3a), region = 20  ;;  %s103_s21 = sand.u32 (%p47_p4), 1, %s501_s8  }
  0x18   : > { %s108_s22 = smul.u32 (%p47_p4), 6, %s509_s10  ;;  %s598_s27 = scalar_lea.sflag (%p47_p4), [#allocation3], %s103_s21 }
  0x19   : > { %s339_s23 = smul.u32 (%p47_p4), 48, %s103_s21 }
  0x1a   : > { %s109_s24 = ssub.s32 (%p47_p4), 10, %s108_s22 }
  0x1b   : > { %p110_p13 = scmp.lt.s32.totalorder (%p47_p4), %s109_s24, 6  ;;  %s107_s28 = scalar_lea.vmem (%p47_p4), [#allocation2], %s339_s23 }
  0x1e   : > { %s734_s24 = smov (!%p110_p13, %s109_s24), 6 }
  0x1f   : > { %s595_s25 = sshll.u32 %s734_s24, 7 }
  0x20   : > { %s114_s26 = ssub.s32 768, %s595_s25 }
  0x21   : > { %115 = vsyncadd %s598_s27, %s114_s26  ;;  %p312_p0 = scmp.ne.s32.totalorder %s595_s25, 0  ;;  %s338_s29 = smul.u32 768, %s509_s10 }
  0x22   : > { %s121_s30 = sshll.u32 %s107_s28, 4  ;;  %s407_s15 = scalar_lea.hbm %s718_s0, 1280  ;;  %s608_s30 = int_to_ptr.vmem [resolvable:$true] %s121_s30 }
  0x23   : > { %s606_s4 = scalar_lea.hbm %s718_s0, %s338_s29 }
  0x24   : > { %s403_s5 = scalar_lea.hbm %s606_s4, %s595_s25  ;;  %p408_p4 = scmp.lt.u32.totalorder %s606_s4, %s718_s0 }
  0x25   : > { %p404_p1 = scmp.ne.s32.totalorder %s606_s4, %s403_s5  ;;  %p409_p5 = scmp.lt.u32.totalorder %s407_s15, %s403_s5 }
  0x26   : > { %p411_p7 = scmp.lt.u32.totalorder %s403_s5, %s606_s4 }
  0x27   : > { %p405_p2 = pnand %p404_p1, %p312_p0  ;;  %p410_p6 = por %p409_p5, %p408_p4 }
  0x29   : > { %p406_p3 = pneg %p405_p2  ;;  %p412_p10 = por %p411_p7, %p410_p6 }
  0x2b   : > { %p413_p13 = pnand %p412_p10, %p406_p3 }
  0x2d   : > { %416 = shalt.err (!%p413_p13)
}
  0x2e   : > { %s417_s22 = scalar_lea.vmem %s608_s30, %s595_s25  ;;  %s515_s23 = smov [#allocation2]  }
  0x2f   : > { %p418_p1 = scmp.ne.s32.totalorder %s608_s30, %s417_s22  ;;  %s421_s24 = sshll.u32 %s515_s23, 4  ;;  %s422_s24 = int_to_ptr.vmem [resolvable:$false] %s421_s24 }
  0x30   : > { %s423_s26 = scalar_lea.vmem %s422_s24, 1536  ;;  %p424_p11 = scmp.lt.s32.totalorder %s608_s30, %s422_s24 }
  0x31   : > { %p419_p2 = pnand %p418_p1, %p312_p0  ;;  %p425_p4 = scmp.lt.s32.totalorder %s423_s26, %s417_s22 }
  0x33   : > { %p420_p12 = pneg %p419_p2  ;;  %p426_p5 = por %p425_p4, %p424_p11 }
  0x35   : > { %p427_p6 = pnand %p426_p5, %p420_p12 }
  0x37   : > { %430 = shalt.err (!%p427_p6)
}
  0x38   : > { %s516_s28 = smov 128   ;;  %s517_s29 = smov 8  }
  0x39   : > { %127 = dma.hbm_to_vmem [thread:$0]  (%p312_p0), %s606_s4, %s595_s25, %s608_s30, %s598_s27, %s516_s28, %s516_s28, %s517_s29  }
  0x3a PF: > { %p316_p3 = scmp.ge.s32.totalorder %s513_s11, 1  ;;  %p129_p7 = scmp.lt.s32.totalorder %s513_s11, 3 }
  0x3c   : > { %p130_p10 = pnand %p316_p3, %p129_p7 }
  0x3d   : > { %s638_s2 = sand.u32 (!%p130_p10), 1, %s497_s7  }
  0x3e   : > { %133 = sbr.rel (%p130_p10) target bundleno = 114 (0x72), region = 24  ;;  %s136_s5 = scalar_lea.sflag (!%p130_p10), [#allocation3], %s638_s2 }
  0x3f   : > { %s340_s3 = smul.u32 (!%p130_p10), 48, %s638_s2 }
  0x41   : > { %s139_s12 = scalar_lea.vmem (!%p130_p10), [#allocation2], %s340_s3 }
  0x45   : > { %484 = dma.done.wait (%p575_p8), %s136_s5, 768  }
  0x46   : > { %486 = vsyncadd (%p575_p8), %s136_s5, 4294966528  ;;  %s646_s25 = scalar_lea.vmem [#allocation5], %s340_s3  ;;  %p317_p11 = scmp.eq.s32.totalorder %s505_s9, 1 }
  0x47   : > { %v168_v0 = vld [vmem:[%s139_s12] sm:$0xff] (!%p317_p11)  ;;  %v318_v1 = vld [vmem:[%s139_s12 + $0x8] sm:$0xff] (!%p317_p11)  ;;  %v319_v2 = vld [vmem:[%s139_s12 + $0x10] sm:$0xff] (!%p317_p11) }
  0x48   : > { %167 = sbr.rel (%p317_p11) target bundleno = 79 (0x4f), region = 32  ;;  %169 = vst [vmem:[%s646_s25] sm:$0xff] (!%p317_p11), %v168_v0  ;;  %172 = vst [vmem:[%s646_s25 + $0x8] sm:$0xff] (!%p317_p11), %v318_v1  ;;  %v320_v3 = vld [vmem:[%s139_s12 + $0x18] sm:$0xff] (!%p317_p11)  ;;  %v322_v4 = vld [vmem:[%s139_s12 + $0x20] sm:$0xff] (!%p317_p11) }
  0x49   : > { %175 = vst [vmem:[%s646_s25 + $0x10] sm:$0xff] (!%p317_p11), %v319_v2  ;;  %v324_v5 = vld [vmem:[%s139_s12 + $0x28] sm:$0xff] (!%p317_p11)  ;;  %321 = vst [vmem:[%s646_s25 + $0x18] sm:$0xff] (!%p317_p11), %v320_v3 }
  0x4a   : > { %323 = vst [vmem:[%s646_s25 + $0x20] sm:$0xff] (!%p317_p11), %v322_v4  ;;  %325 = vst [vmem:[%s646_s25 + $0x28] sm:$0xff] (!%p317_p11), %v324_v5 }
  0x4f PF: > { %p326_p8 = scmp.ne.s32.totalorder %s505_s9, 1 }
  0x50   : > { %v190_v6 = vld [vmem:[%s139_s12] sm:$0xff] (!%p326_p8)  ;;  %v327_v7 = vld [vmem:[%s139_s12 + $0x8] sm:$0xff] (!%p326_p8)  ;;  %v328_v8 = vld [vmem:[%s139_s12 + $0x10] sm:$0xff] (!%p326_p8)  ;;  %v518_v10 = vmov (!%p326_p8), 0.0  }
  0x51   : > { %189 = sbr.rel (%p326_p8) target bundleno = 88 (0x58), region = 36  ;;  %191 = vst [vmem:[%s646_s25] sm:$0xff] (!%p326_p8), %v190_v6  ;;  %194 = vst [vmem:[%s646_s25 + $0x8] sm:$0xff] (!%p326_p8), %v327_v7  ;;  %v329_v9 = vld [vmem:[%s139_s12 + $0x18] sm:$0xff] (!%p326_p8) }
  0x52   : > { %197 = vst [vmem:[%s646_s25 + $0x10] sm:$0xff] (!%p326_p8), %v328_v8  ;;  %331 = vst [vmem:[%s646_s25 + $0x20] sm:$0xff] (!%p326_p8), %v518_v10 }
  0x53   : > { %332 = vst [vmem:[%s646_s25 + $0x28] sm:$0xff] (!%p326_p8), %v518_v10  ;;  %330 = vst [vmem:[%s646_s25 + $0x18] sm:$0xff] (!%p326_p8), %v329_v9 }
  0x58 PF: > { %s341_s17 = smul.u32 768, %s505_s9  ;;  %s221_s27 = sshll.u32 %s646_s25, 4  ;;  %s669_s27 = int_to_ptr.vmem [resolvable:$true] %s221_s27 }
  0x59   : > { %s205_s15 = scalar_lea.sflag [#allocation4], %s638_s2  ;;  %s431_s16 = scalar_lea.vmem %s669_s27, 768 }
  0x5a   : > { %s667_s13 = scalar_lea.hbm %s719_s1, %s341_s17  ;;  %p432_p12 = scmp.ne.s32.totalorder %s669_s27, %s431_s16 }
  0x5b   : > { %s519_s21 = smov [#allocation5]  }
  0x5c   : > { %p433_p0 = pnand %p432_p12, %p579_p9  ;;  %s435_s22 = sshll.u32 %s519_s21, 4  ;;  %s436_s22 = int_to_ptr.vmem [resolvable:$false] %s435_s22 }
  0x5d   : > { %s437_s9 = scalar_lea.vmem %s436_s22, 1536  ;;  %p438_p1 = scmp.lt.s32.totalorder %s669_s27, %s436_s22 }
  0x5e   : > { %p434_p13 = pneg %p433_p0  ;;  %p439_p2 = scmp.lt.s32.totalorder %s437_s9, %s431_s16 }
  0x60   : > { %p440_p4 = por %p439_p2, %p438_p1 }
  0x62   : > { %p441_p5 = pnand %p440_p4, %p434_p13 }
  0x64   : > { %444 = shalt.err (!%p441_p5)
}
  0x65   : > { %s445_s23 = scalar_lea.hbm %s667_s13, 768  ;;  %s449_s28 = scalar_lea.hbm %s719_s1, 1536 }
  0x66   : > { %p446_p6 = scmp.ne.s32.totalorder %s667_s13, %s445_s23  ;;  %p450_p10 = scmp.lt.u32.totalorder %s667_s13, %s719_s1 }
  0x67   : > { %p451_p11 = scmp.lt.u32.totalorder %s449_s28, %s445_s23  ;;  %p453_p12 = scmp.lt.u32.totalorder %s445_s23, %s667_s13 }
  0x68   : > { %p447_p3 = pnand %p446_p6, %p579_p9 }
  0x69   : > { %p452_p8 = por %p451_p11, %p450_p10 }
  0x6a   : > { %p448_p7 = pneg %p447_p3 }
  0x6b   : > { %p454_p0 = por %p453_p12, %p452_p8 }
  0x6d   : > { %p455_p13 = pnand %p454_p0, %p448_p7 }
  0x6f   : > { %458 = shalt.err (!%p455_p13)
}
  0x70   : > { %s520_s5 = smov 384   ;;  %s521_s12 = smov 24  }
  0x71   : > { %343 = dma.vmem_to_hbm [thread:$0]  (%p579_p9), %s669_s27, 768, %s667_s13, %s205_s15, %s520_s5, %s520_s5, %s521_s12  }
  0x72 PF: > { %s236_s25 = sand.u32 1, %s493_s6   ;;  %p724_p1 = scmp.ne.s32.totalorder %s723_s20, 0 }
  0x73   : > { %p725_p2 = scmp.ge.s32.totalorder %s513_s11, 2  ;;  %s237_s17 = scalar_lea.sflag [#allocation4], %s236_s25 }
  0x75   : > { %p346_p4 = pnand %p725_p2, %p724_p1 }
  0x77   : > { %488 = dma.done.wait (!%p346_p4), %s237_s17, 768  }
  0x78   : > { %490 = vsyncadd (!%p346_p4), %s237_s17, 4294966528  ;;  %s17_s11 = sadd.s32 1, %s513_s11   ;;  %s726_s6 = smov %s497_s7 }
  0x79   : > { %p14_p5 = scmp.ge.s32.totalorder %s17_s11, 4   ;;  %s727_s7 = smov %s501_s8 }
  0x7a   : > { %s728_s8 = smov %s584_s19  ;;  %s729_s9 = smov %s509_s10 }
  0x7b   : > { %s730_s10 = smov %s732_s14  ;;  %16 = sbr.rel (!%p14_p5) target bundleno = 6 (0x6), region = 87 }
  0x82   :  { %242 = vsyncpa [#allocation3], 1 }
  0x83   :  { %244 = vsyncpa [#allocation3 + $0x1], 1 }
  0x84   :  { %245 = vsyncpa [#allocation4], 1 }
  0x85   :  { %247 = vsyncpa [#allocation4 + $0x1], 1 }

</bundles_post_ra>
